<compile_context>
chip_gen: v6e
topology: v6e:2x2x1
jax: 0.10.0
libtpu: 0.0.40
codegen_flags: <defaults>
</compile_context>

<pallas_src>
import functools

import jax
import jax.numpy as jnp
from jax.experimental import pallas as pl
from jax.experimental.pallas import tpu as pltpu


# ----------------------------------------------------------------------------
# Kernels
# ----------------------------------------------------------------------------
def _fused_kernel(x_ref, w_ref, b_ref, o_ref, *, compute_dtype):
    """Single folded matmul + bias.

    x_ref : (tile, p*d_in)        packed input rows (streamed)
    w_ref : (p*d_in, p*d_out_pad) block-diagonal folded weight (resident)
    b_ref : (1, p*d_out_pad)      folded bias, f32 (resident)
    o_ref : (tile, p*d_out_pad)   packed, lane-dense output
    """
    x = x_ref[...]
    if compute_dtype is not None and x.dtype != compute_dtype:
        x = x.astype(compute_dtype)          # in-kernel cast: no extra HBM pass
    acc = jnp.dot(x, w_ref[...], preferred_element_type=jnp.float32)
    o_ref[...] = (acc + b_ref[...]).astype(o_ref.dtype)


def _unfused_kernel(x_ref, w1_ref, b1_ref, w2_ref, b2_ref, o_ref, *, compute_dtype):
    """Two-matmul fallback (rank-80 bottleneck kept) when folding would inflate
    MXU work / the resident weight. Both weights stay resident in VMEM."""
    x = x_ref[...]
    if compute_dtype is not None and x.dtype != compute_dtype:
        x = x.astype(compute_dtype)
    h = jnp.dot(x, w1_ref[...], preferred_element_type=jnp.float32) + b1_ref[...]
    h = h.astype(w2_ref.dtype)
    o = jnp.dot(h, w2_ref[...], preferred_element_type=jnp.float32) + b2_ref[...]
    o_ref[...] = o.astype(o_ref.dtype)


# ----------------------------------------------------------------------------
# Helpers
# ----------------------------------------------------------------------------
def _round_up(x, m):
    return ((x + m - 1) // m) * m


def _sublane_multiple(dtype):
    # f32 -> 8, bf16 -> 16, int8/fp8 -> 32 (sub-32-bit dtypes pack along sublanes)
    return max(8, 32 // jnp.dtype(dtype).itemsize)


def _lane_pack(d_out):
    """Return (p, d_out_pad) with p * d_out_pad == 128 for d_out < 128 (lane-dense
    output slab); for d_out >= 128 no packing (p = 1)."""
    if d_out >= 128:
        return 1, d_out
    d_out_pad = 1 << (d_out - 1).bit_length()    # next power of two, divides 128
    return 128 // d_out_pad, d_out_pad


def _pick_tile(m_need, row_bytes, target_block_bytes, sub):
    """Rows per grid step: ~target_block_bytes of x+out, sublane-aligned, and
    capped so the grid has >= 2 steps (keeps both v7x TensorCores busy)."""
    if m_need <= sub:
        return m_need                            # single full block (== full dim)
    tile = max(sub, target_block_bytes // max(row_bytes, 1))
    two_step_cap = _round_up(-(-m_need // 2), sub)
    tile = min(tile, two_step_cap)
    tile = max(sub, (tile // sub) * sub)
    return tile


# ----------------------------------------------------------------------------
# Forward factory: fold weights ONCE, return a jitted forward.
# ----------------------------------------------------------------------------
def make_generator_forward(w1, b1, w2, b2, *,
                           compute_dtype=None,
                           out_dtype=None,
                           target_block_bytes=4 << 20,   # ~4 MiB/step: safe on v5e/v7x;
                                                         # raise to ~8 MiB on v6e
                           fold=None):
    """w1: (d_in, hidden), b1: (hidden,)/(1,hidden), w2: (hidden, d_out), b2 likewise.
    compute_dtype: optional MXU-operand dtype (e.g. jnp.bfloat16); accumulation,
                   bias add stay f32. out_dtype: optional output store dtype."""
    f32 = jnp.float32
    w1 = jnp.asarray(w1, f32)
    w2 = jnp.asarray(w2, f32)
    b1 = jnp.asarray(b1, f32).reshape(1, -1)
    b2 = jnp.asarray(b2, f32).reshape(1, -1)
    d_in, hidden = w1.shape
    d_out = w2.shape[1]
    w_dtype = compute_dtype if compute_dtype is not None else f32

    p, d_out_pad = _lane_pack(d_out)
    kron_bytes = (p * d_in) * (p * d_out_pad) * 4
    fold_wins = (d_in * d_out_pad <= hidden * (d_in + d_out_pad)) and kron_bytes <= (8 << 20)
    if fold is None:
        fold = fold_wins

    if fold:
        # ---- fold the two affine layers (exact: no nonlinearity between them) ----
        w = w1 @ w2                                   # (d_in, d_out)
        b = b1 @ w2 + b2                              # (1, d_out)
        if d_out_pad != d_out:                        # lane-dense store padding (zeros)
            w = jnp.pad(w, ((0, 0), (0, d_out_pad - d_out)))
            b = jnp.pad(b, ((0, 0), (0, d_out_pad - d_out)))
        w_blk = jnp.kron(jnp.eye(p, dtype=f32), w) if p > 1 else w   # (p*d_in, p*d_out_pad)
        b_blk = jnp.tile(b, (1, p)) if p > 1 else b                  # (1, p*d_out_pad)
        w_blk = w_blk.astype(w_dtype)
        b_blk = b_blk.astype(f32)

        def fwd(x):
            assert x.ndim == 2 and x.shape[1] == d_in
            B = x.shape[0]
            out_dt = out_dtype if out_dtype is not None else x.dtype
            sub = max(_sublane_multiple(x.dtype), _sublane_multiple(out_dt))
            in_bytes = jnp.dtype(x.dtype).itemsize
            out_bytes = jnp.dtype(out_dt).itemsize

            # Pad rows ONLY to a multiple of p (required by the packing reshape);
            # partial grid blocks are handled by Pallas store masking.
            b_rows = _round_up(B, p)
            if b_rows != B:
                x = jnp.pad(x, ((0, b_rows - B), (0, 0)))
            m_need = b_rows // p
            x_packed = x.reshape(m_need, p * d_in)    # contiguous (free) reshape

            row_bytes = p * (d_in * in_bytes + d_out_pad * out_bytes)
            tile = _pick_tile(m_need, row_bytes, target_block_bytes, sub)
            grid_m = pl.cdiv(m_need, tile)

            out_packed = pl.pallas_call(
                functools.partial(_fused_kernel, compute_dtype=compute_dtype),
                out_shape=jax.ShapeDtypeStruct((m_need, p * d_out_pad), out_dt),
                grid_spec=pltpu.PrefetchScalarGridSpec(
                    num_scalar_prefetch=0,
                    grid=(grid_m,),
                    in_specs=[
                        pl.BlockSpec((tile, p * d_in), lambda i: (i, 0)),       # streamed x
                        pl.BlockSpec((p * d_in, p * d_out_pad), lambda i: (0, 0)),  # resident W
                        pl.BlockSpec((1, p * d_out_pad), lambda i: (0, 0)),     # resident bias
                    ],
                    out_specs=pl.BlockSpec((tile, p * d_out_pad), lambda i: (i, 0)),
                ),
                compiler_params=pltpu.CompilerParams(
                    dimension_semantics=("parallel",),      # megacore-shardable on v7x
                ),
                cost_estimate=pl.CostEstimate(              # memory-bound custom call
                    flops=2 * m_need * (p * d_in) * (p * d_out_pad),
                    transcendentals=0,
                    bytes_accessed=(x_packed.size * in_bytes
                                    + w_blk.size * jnp.dtype(w_blk.dtype).itemsize
                                    + b_blk.size * 4
                                    + m_need * p * d_out_pad * out_bytes),
                ),
            )(x_packed, w_blk, b_blk)

            out = out_packed.reshape(b_rows, d_out_pad)
            if d_out_pad != d_out:
                out = out[:, :d_out]
            if b_rows != B:
                out = out[:B]
            return out

        return jax.jit(fwd)

    # ---------------- unfused two-matmul fallback ----------------
    # Pad hidden to a lane-dense 128 multiple with zero weights/bias (exact).
    h_pad = _round_up(hidden, 128)
    w1_p = jnp.pad(w1, ((0, 0), (0, h_pad - hidden))).astype(w_dtype)
    b1_p = jnp.pad(b1, ((0, 0), (0, h_pad - hidden))).astype(f32)
    w2_p = jnp.pad(w2, ((0, h_pad - hidden), (0, 0))).astype(w_dtype)
    b2_p = b2.astype(f32)

    def fwd_unfused(x):
        assert x.ndim == 2 and x.shape[1] == d_in
        B = x.shape[0]
        out_dt = out_dtype if out_dtype is not None else x.dtype
        sub = max(_sublane_multiple(x.dtype), _sublane_multiple(out_dt))
        in_bytes = jnp.dtype(x.dtype).itemsize
        out_bytes = jnp.dtype(out_dt).itemsize
        row_bytes = d_in * in_bytes + d_out * out_bytes
        tile = _pick_tile(B, row_bytes, target_block_bytes, sub)
        grid_m = pl.cdiv(B, tile)

        return pl.pallas_call(
            functools.partial(_unfused_kernel, compute_dtype=compute_dtype),
            out_shape=jax.ShapeDtypeStruct((B, d_out), out_dt),
            grid_spec=pltpu.PrefetchScalarGridSpec(
                num_scalar_prefetch=0,
                grid=(grid_m,),
                in_specs=[
                    pl.BlockSpec((tile, d_in), lambda i: (i, 0)),     # streamed x
                    pl.BlockSpec((d_in, h_pad), lambda i: (0, 0)),    # resident w1
                    pl.BlockSpec((1, h_pad), lambda i: (0, 0)),       # resident b1
                    pl.BlockSpec((h_pad, d_out), lambda i: (0, 0)),   # resident w2
                    pl.BlockSpec((1, d_out), lambda i: (0, 0)),       # resident b2
                ],
                out_specs=pl.BlockSpec((tile, d_out), lambda i: (i, 0)),
            ),
            compiler_params=pltpu.CompilerParams(
                dimension_semantics=("parallel",)),
        )(x, w1_p, b1_p, w2_p, b2_p)

    return jax.jit(fwd_unfused)


def generator_forward(x, w1, b1, w2, b2, **kwargs):
    """Convenience one-shot wrapper (re-folds weights every call; prefer
    make_generator_forward for repeated inference)."""
    return make_generator_forward(w1, b1, w2, b2, **kwargs)(x)


def init_generator_params(key, num_inputs, num_outputs, hidden=80, dtype=jnp.float32):
    """Deterministic nn.Linear-style init (uniform(+/- 1/sqrt(fan_in)))."""
    k1, k2, k3, k4 = jax.random.split(key, 4)
    bound1 = 1.0 / (num_inputs ** 0.5)
    bound2 = 1.0 / (hidden ** 0.5)
    # stored as (in, out) = transpose of PyTorch's (out, in)
    w1 = jax.random.uniform(k1, (num_inputs, hidden), dtype, -bound1, bound1)
    b1 = jax.random.uniform(k2, (1, hidden), dtype, -bound1, bound1)
    w2 = jax.random.uniform(k3, (hidden, num_outputs), dtype, -bound2, bound2)
    b2 = jax.random.uniform(k4, (1, num_outputs), dtype, -bound2, bound2)
    return w1, b1, w2, b2


if __name__ == "__main__":
    key = jax.random.PRNGKey(0)
    kx, kp = jax.random.split(key)

    # Small, deliberately non-aligned batch (37 % p=8 != 0) to exercise the
    # pad-to-multiple-of-p + masked partial-block path.
    batch = 37
    num_inputs = 32
    num_outputs = 16

    x = jax.random.normal(kx, (batch, num_inputs), jnp.float32)
    w1, b1, w2, b2 = init_generator_params(kp, num_inputs, num_outputs)

    # Pure-JAX reference (matches the PyTorch forward(): relu/dropout unused).
    ref = (x @ w1 + b1) @ w2 + b2

    # Fused f32 path (weights folded once in the factory, single MXU matmul).
    fwd = make_generator_forward(w1, b1, w2, b2)
    out = jax.block_until_ready(fwd(x))
    assert out.shape == (batch, num_outputs)
    assert jnp.allclose(out, ref, atol=1e-4, rtol=1e-4), float(jnp.max(jnp.abs(out - ref)))

    # bf16-MXU-operand path: x is cast in-kernel (no extra HBM pass), f32 accumulate.
    fwd_bf16 = make_generator_forward(w1, b1, w2, b2, compute_dtype=jnp.bfloat16)
    out_bf16 = jax.block_until_ready(fwd_bf16(x))
    assert out_bf16.shape == (batch, num_outputs)
    assert jnp.allclose(out_bf16, ref, atol=5e-2, rtol=5e-2)

    # Forced two-matmul fallback path (the guard's large-dim branch).
    fwd_unfused = make_generator_forward(w1, b1, w2, b2, fold=False)
    out_uf = jax.block_until_ready(fwd_unfused(x))
    assert jnp.allclose(out_uf, ref, atol=1e-4, rtol=1e-4)

    # Note: relu / nn.Dropout exist on the module but are not called in forward().
    print("KERNEL_OK")
</pallas_src>

<mosaic_0001>
module attributes {stable_mosaic.version = 11 : i64} {
  func.func @_fused_kernel(%arg0: i32, %arg1: memref<5x256xf32, #tpu.memory_space<vmem>>, %arg2: memref<256x128xf32, #tpu.memory_space<vmem>>, %arg3: memref<1x128xf32, #tpu.memory_space<vmem>>, %arg4: memref<5x128xf32, #tpu.memory_space<vmem>>) attributes {dimension_semantics = [#tpu.dimension_semantics<parallel>], iteration_bounds = array<i64: 1>, scalar_prefetch = 0 : i64, scratch_operands = 0 : i64, tpu.core_type = #tpu.core_type<tc>, window_params = [{transform_indices = @transform_0, window_bounds = array<i64: 5, 256>}, {pipeline_mode = #tpu.pipeline_mode<synchronous>, transform_indices = @transform_1, window_bounds = array<i64: 256, 128>}, {pipeline_mode = #tpu.pipeline_mode<synchronous>, transform_indices = @transform_2, window_bounds = array<i64: 1, 128>}, {transform_indices = @transform_3, window_bounds = array<i64: 5, 128>}]} {
    %c0 = arith.constant 0 : index
    %c0_0 = arith.constant 0 : index
    %0 = vector.load %arg1[%c0, %c0_0] : memref<5x256xf32, #tpu.memory_space<vmem>>, vector<5x256xf32>
    %c0_1 = arith.constant 0 : index
    %c0_2 = arith.constant 0 : index
    %1 = vector.load %arg2[%c0_1, %c0_2] : memref<256x128xf32, #tpu.memory_space<vmem>>, vector<256x128xf32>
    %cst = arith.constant dense<0.000000e+00> : vector<5x128xf32>
    %2 = tpu.matmul %0, %1, %cst {dimension_numbers = #tpu.dot_dimension_numbers<[1], [0], [0], [1], [0, 0, 1, 1], [], []>} : vector<5x256xf32>, vector<256x128xf32>, vector<5x128xf32> -> vector<5x128xf32>
    %c0_3 = arith.constant 0 : index
    %c0_4 = arith.constant 0 : index
    %3 = vector.load %arg3[%c0_3, %c0_4] : memref<1x128xf32, #tpu.memory_space<vmem>>, vector<1x128xf32>
    %4 = vector.broadcast %3 : vector<1x128xf32> to vector<5x128xf32>
    %5 = arith.addf %2, %4 : vector<5x128xf32>
    %c0_5 = arith.constant 0 : index
    %c0_6 = arith.constant 0 : index
    %6 = vector.load %arg4[%c0_5, %c0_6] : memref<5x128xf32, #tpu.memory_space<vmem>>, vector<5x128xf32>
    tpu.vector_store %arg4[%c0_5, %c0_6], %5 {strides = array<i32>} : memref<5x128xf32, #tpu.memory_space<vmem>>, vector<5x128xf32>,
    return
  }
  func.func @transform_0(%arg0: i32) -> (i32, i32) {
    %c0_i32 = arith.constant 0 : i32
    %c0_i32_0 = arith.constant 0 : i32
    return %arg0, %c0_i32 : i32, i32
  }
  func.func @transform_1(%arg0: i32) -> (i32, i32) {
    %c0_i32 = arith.constant 0 : i32
    %c0_i32_0 = arith.constant 0 : i32
    %c0_i32_1 = arith.constant 0 : i32
    return %c0_i32, %c0_i32_0 : i32, i32
  }
  func.func @transform_2(%arg0: i32) -> (i32, i32) {
    %c0_i32 = arith.constant 0 : i32
    %c0_i32_0 = arith.constant 0 : i32
    %c0_i32_1 = arith.constant 0 : i32
    return %c0_i32, %c0_i32_0 : i32, i32
  }
  func.func @transform_3(%arg0: i32) -> (i32, i32) {
    %c0_i32 = arith.constant 0 : i32
    %c0_i32_0 = arith.constant 0 : i32
    return %arg0, %c0_i32 : i32, i32
  }
}

</mosaic_0001>

<bundles_post_ra>
// kernel: fwd.1
= control target key start
LH: loop header
LB: loop body
LE: loop exit
PB: predicated region body
PF: predicated region fallthrough
CT: control target
= control target key end

     0   :  { %8 = vsyncpa [#allocation3], 0  ;;  %s206_s12 = smov [#allocation2]   ;;  %s244_s0 = inlined_call_operand.vmem [shape: f32[5,256], index: 0, kind: input, shape index: {}]   ;;  %s245_s1 = inlined_call_operand.hbm [shape: f32[256,128], index: 1, kind: input, shape index: {}]   ;;  %s246_s2 = inlined_call_operand.vmem [shape: f32[1,128], index: 2, kind: input, shape index: {}]   ;;  %s247_s3 = inlined_call_operand.vmem [shape: f32[5,128], index: 3, kind: output, shape index: {}]  }
   0x1   :  { %s16_s13 = sshll.u32 %s206_s12, 4  ;;  %s17_s13 = int_to_ptr.vmem [resolvable:$true] %s16_s13 }
   0x2   :  { %s192_s14 = scalar_lea.vmem %s17_s13, 4096  ;;  %p197_p1 = scmp.lt.s32.totalorder %s17_s13, %s17_s13 }
   0x3   :  { %p193_p0 = scmp.ne.s32.totalorder %s17_s13, %s192_s14  ;;  %p198_p2 = scmp.lt.s32.totalorder %s192_s14, %s192_s14 }
   0x5   :  { %p199_p3 = por %p198_p2, %p197_p1 }
   0x7   :  { %p200_p4 = pnand %p199_p3, %p193_p0 }
   0x9   :  { %203 = shalt.err (!%p200_p4)
}
   0xa   :  { %s207_s15 = smov 128   ;;  %s208_s16 = smov 8  }
   0xb   :  { %22 = dma.hbm_to_vmem [thread:$0]  %s245_s1, 4096, %s17_s13, [#allocation3], %s207_s15, %s207_s15, %s208_s16  }
   0xc   :  { %204 = dma.done.wait [#allocation3], 4096  }
   0xd   :  { %205 = vsyncadd [#allocation3], 4294963200  ;;  %v61_v0 = vld [vmem:[#allocation2 + $0xf8] sm:$0xff]  ;;  %v60_v2 = vld [vmem:[#allocation2 + $0xf0] sm:$0xff] }
   0xe   :  { %v45_v1 = vld [vmem:[#allocation2 + $0x78] sm:$0xff]  ;;  %146 = vmatprep.subr.mxu0 %v61_v0  ;;  %v44_v3 = vld [vmem:[#allocation2 + $0x70] sm:$0xff]  ;;  %v59_v4 = vld [vmem:[#allocation2 + $0xe8] sm:$0xff] }
   0xf   :  { %147 = vmatpush3.msra.mxu0 %v45_v1  ;;  %v43_v5 = vld [vmem:[#allocation2 + $0x68] sm:$0xff]  ;;  %v58_v6 = vld [vmem:[#allocation2 + $0xe0] sm:$0xff]  ;;  %v57_v8 = vld [vmem:[#allocation2 + $0xd8] sm:$0xff] }
  0x10   :  { %148 = vmatprep.subr.mxu0 %v60_v2  ;;  %v42_v7 = vld [vmem:[#allocation2 + $0x60] sm:$0xff]  ;;  %v41_v9 = vld [vmem:[#allocation2 + $0x58] sm:$0xff]  ;;  %v56_v10 = vld [vmem:[#allocation2 + $0xd0] sm:$0xff] }
  0x11   :  { %149 = vmatpush3.msra.mxu0 %v44_v3  ;;  %v40_v11 = vld [vmem:[#allocation2 + $0x50] sm:$0xff]  ;;  %v55_v12 = vld [vmem:[#allocation2 + $0xc8] sm:$0xff]  ;;  %v54_v15 = vld [vmem:[#allocation2 + $0xc0] sm:$0xff] }
  0x12   :  { %150 = vmatprep.subr.mxu0 %v59_v4  ;;  %v29_v13 = vld [vmem:[%s244_s0 + $0x8] sm:$0x1f]  ;;  %v38_v16 = vld [vmem:[#allocation2 + $0x40] sm:$0xff]  ;;  %v53_v17 = vld [vmem:[#allocation2 + $0xb8] sm:$0xff] }
  0x13   :  { %151 = vmatpush3.msra.mxu0 %v43_v5  ;;  %v39_v14 = vld [vmem:[#allocation2 + $0x48] sm:$0xff]  ;;  %133 = vmatprep.mubr.f32.mxu0 %v29_v13  ;;  %v37_v18 = vld [vmem:[#allocation2 + $0x38] sm:$0xff]  ;;  %v52_v19 = vld [vmem:[#allocation2 + $0xb0] sm:$0xff] }
  0x14   :  { %152 = vmatprep.subr.mxu0 %v58_v6  ;;  %v36_v20 = vld [vmem:[#allocation2 + $0x30] sm:$0xff]  ;;  %v51_v21 = vld [vmem:[#allocation2 + $0xa8] sm:$0xff]  ;;  %v50_v23 = vld [vmem:[#allocation2 + $0xa0] sm:$0xff] }
  0x15   :  { %153 = vmatpush3.msra.mxu0 %v42_v7  ;;  %v35_v22 = vld [vmem:[#allocation2 + $0x28] sm:$0xff]  ;;  %v34_v24 = vld [vmem:[#allocation2 + $0x20] sm:$0xff]  ;;  %v49_v25 = vld [vmem:[#allocation2 + $0x98] sm:$0xff] }
  0x16   :  { %154 = vmatprep.subr.mxu0 %v57_v8  ;;  %v33_v26 = vld [vmem:[#allocation2 + $0x18] sm:$0xff]  ;;  %v48_v27 = vld [vmem:[#allocation2 + $0x90] sm:$0xff]  ;;  %v47_v29 = vld [vmem:[#allocation2 + $0x88] sm:$0xff] }
  0x17   :  { %155 = vmatpush3.msra.mxu0 %v41_v9  ;;  %v32_v28 = vld [vmem:[#allocation2 + $0x10] sm:$0xff]  ;;  %v31_v30 = vld [vmem:[#allocation2 + $0x8] sm:$0xff]  ;;  %v46_v31 = vld [vmem:[#allocation2 + $0x80] sm:$0xff] }
  0x18   :  { %156 = vmatprep.subr.mxu0 %v56_v10  ;;  %v30_v32 = vld [vmem:[#allocation2] sm:$0xff] }
  0x19   :  { %157 = vmatpush3.msra.mxu0 %v40_v11  ;;  %v28_v33 = vld [vmem:[%s244_s0] sm:$0x1f] }
  0x1a   :  { %158 = vmatprep.subr.mxu0 %v55_v12  ;;  %v145_v35 = vld [vmem:[%s246_s2] ss:$0 sm:$0xff] }
  0x1b   :  { %159 = vmatpush3.msra.mxu0 %v39_v14 }
  0x1c   :  { %160 = vmatprep.subr.mxu0 %v54_v15 }
  0x1d   :  { %161 = vmatpush3.msra.mxu0 %v38_v16 }
  0x1e   :  { %162 = vmatprep.subr.mxu0 %v53_v17 }
  0x1f   :  { %163 = vmatpush3.msra.mxu0 %v37_v18 }
  0x20   :  { %164 = vmatprep.subr.mxu0 %v52_v19 }
  0x21   :  { %165 = vmatpush3.msra.mxu0 %v36_v20 }
  0x22   :  { %166 = vmatprep.subr.mxu0 %v51_v21 }
  0x23   :  { %167 = vmatpush3.msra.mxu0 %v35_v22 }
  0x24   :  { %168 = vmatprep.subr.mxu0 %v50_v23 }
  0x25   :  { %169 = vmatpush3.msra.mxu0 %v34_v24 }
  0x26   :  { %170 = vmatprep.subr.mxu0 %v49_v25 }
  0x27   :  { %171 = vmatpush3.msra.mxu0 %v33_v26 }
  0x28   :  { %172 = vmatprep.subr.mxu0 %v48_v27 }
  0x29   :  { %173 = vmatpush3.msra.mxu0 %v32_v28 }
  0x2a   :  { %174 = vmatprep.subr.mxu0 %v47_v29 }
  0x2b   :  { %175 = vmatpush3.msra.mxu0 %v31_v30 }
  0x2c   :  { %176 = vmatprep.subr.mxu0 %v46_v31 }
  0x2d   :  { %177 = vmatpush3.msra.mxu0 %v30_v32 }
  0x2e   :  { %134 = vmatmul.mubr.f32.vlgmr.msra.gmra.mxu0 %v28_v33 }
  0xee   :  { %v178_v34 = vpop.f32.mrf.mxu0 }
  0xf0   :  { %v179_v36 = vpop.f32.mrf.mxu0 }
  0xf1   :  { %v180_v37 = vadd.f32 %v179_v36, %v178_v34 }
  0xf3   :  { %v136_v38 = vadd.f32 %v180_v37, %v145_v35 }
  0xf5   :  { %139 = vst [vmem:[%s247_s3] sm:$0x1f] %v136_v38 }
  0xf6   :  { %144 = vsyncpa [#allocation3], 1 }

</bundles_post_ra>
